<compile_context>
chip_gen: v6e
topology: v6e:2x2x1
jax: 0.10.0
libtpu: 0.0.40
codegen_flags: <defaults>
</compile_context>

<pallas_src>
import jax
import jax.numpy as jnp
from jax import lax
from jax.experimental import pallas as pl
from jax.experimental.pallas import tpu as pltpu


def _vmem_capacity_bytes():
    try:
        return int(pltpu.get_tpu_info().vmem_capacity_bytes)
    except Exception:
        return 64 << 20          # conservative fallback (v7x per-TC VMEM)


def _context_gating_kernel(x_ref, mask_ref, wt_ref, bn_ref, o_ref):
    """One output-feature tile of  x * sigmoid(BN(mask) + BN(x @ W^T))."""
    j = pl.program_id(0)
    tn = mask_ref.shape[-1]

    # Linear (bias omitted: exactly cancelled by training-mode BN mean
    # subtraction).  wt_ref holds W^T, so this is a native-layout (1,0)
    # contraction on the MXU.  The cast of the resident x block to the matmul
    # dtype is a cheap VPU op (B*D per step) next to the B*D*tn matmul.
    x2 = jnp.dot(x_ref[...].astype(wt_ref.dtype), wt_ref[...],
                 preferred_element_type=jnp.float32)              # [B, tn]

    eps = jnp.float32(1e-5)

    def batch_norm(v, gamma, beta):
        # Two-pass (centered) batch statistics: robust to large means.
        mu = jnp.mean(v, axis=0, keepdims=True)
        d = v - mu
        var = jnp.mean(d * d, axis=0, keepdims=True)
        return d * (gamma * lax.rsqrt(var + eps)) + beta

    p = bn_ref[...].astype(jnp.float32)                           # [4, tn]
    m = mask_ref[...].astype(jnp.float32)                         # [B, tn]
    t = batch_norm(m, p[0:1, :], p[1:2, :]) + \
        batch_norm(x2, p[2:3, :], p[3:4, :])

    # GLU(cat([x, t], 1), dim=1) == x * sigmoid(t).  The gate tile is sliced
    # from the resident full x block (no duplicate x input stream).
    if tn == x_ref.shape[-1]:                  # compile-time branch
        x_tile = x_ref[...]
    else:
        col = pl.multiple_of(j * tn, tn)
        x_tile = x_ref[:, pl.ds(col, tn)]
    o_ref[...] = (x_tile.astype(jnp.float32) * jax.nn.sigmoid(t)).astype(o_ref.dtype)


def _l2_normalize_kernel(y_ref, o_ref):
    y = y_ref[...].astype(jnp.float32)
    ss = jnp.sum(y * y, axis=-1, keepdims=True)
    # F.normalize(., dim=-1): eps clamp moved onto ||y||^2 (1e-12^2).
    inv = lax.rsqrt(jnp.maximum(ss, jnp.float32(1e-24)))
    o_ref[...] = (y * inv).astype(o_ref.dtype)


def gated_embedding_unit_reasoning(x, mask, w, b, g1, be1, g2, be2, *,
                                   tn=None, matmul_dtype=jnp.bfloat16):
    """x, mask: [B, D]; w: [D, D] (nn.Linear layout [out, in]); b, g*, be*: [1, D].

    `b` is accepted for API parity with nn.Linear but is not used: training-
    mode BatchNorm1d subtracts the per-feature batch mean, so a constant
    per-feature shift cancels exactly.  `matmul_dtype` controls the MXU input
    precision of x @ W^T (pass jnp.float32 for exact parity with the f32
    module; bf16 halves the dominant W byte stream).
    """
    del b
    B, D = x.shape
    assert mask.shape == (B, D) and w.shape == (D, D)

    vmem_cap = _vmem_capacity_bytes()

    # Lane-dense output-feature tile.  Bigger tiles amortize the ~0.35 us/step
    # grid overhead; cap by generation (v5e/v6e: 128 MiB VMEM, v7x: 64 MiB).
    if tn is None:
        cap_tn = 1024 if vmem_cap >= (96 << 20) else 256
        if D <= cap_tn or D % 128 != 0:
            tn = D
        else:
            tn = 128
            for cand in (1024, 512, 256):
                if cand <= cap_tn and D % cand == 0:
                    tn = cand
                    break
    assert D % tn == 0 and (tn % 128 == 0 or tn == D)
    n_tiles = D // tn

    # One-time XLA-side transpose + cast of W: [D_in, D_out], matmul dtype.
    wt = w.T.astype(matmul_dtype)

    # Stack the BatchNorm affine params -> single (4, D) DMA per grid step.
    bn_params = jnp.concatenate(
        [jnp.reshape(v, (1, D)).astype(jnp.float32) for v in (g1, be1, g2, be2)],
        axis=0)

    w_bytes = jnp.dtype(matmul_dtype).itemsize
    x_bytes = x.dtype.itemsize
    out_bytes = x_bytes

    cost = pl.CostEstimate(
        flops=2 * B * D * D + 14 * B * D,
        transcendentals=B * D + 2 * D,
        bytes_accessed=int(D * D * w_bytes + 2 * B * D * x_bytes
                           + B * D * out_bytes + 16 * D),
    )

    # Resident x + double-buffered W/mask/out/param tiles, plus headroom for
    # Mosaic-internal scratch; clamped to ~80% of this generation's VMEM.
    vmem_need = (B * D * x_bytes
                 + 2 * D * tn * w_bytes
                 + 2 * B * tn * mask.dtype.itemsize
                 + 2 * B * tn * out_bytes
                 + 2 * 8 * tn * 4)
    vmem_limit = int(min(max(2 * vmem_need, 16 << 20), int(0.8 * vmem_cap)))

    gated = pl.pallas_call(
        _context_gating_kernel,
        out_shape=jax.ShapeDtypeStruct((B, D), x.dtype),
        grid_spec=pltpu.PrefetchScalarGridSpec(
            num_scalar_prefetch=0,
            grid=(n_tiles,),
            in_specs=[
                pl.BlockSpec((B, D), lambda j: (0, 0)),     # x (resident)
                pl.BlockSpec((B, tn), lambda j: (0, j)),    # mask feature tile
                pl.BlockSpec((D, tn), lambda j: (0, j)),    # W^T column tile
                pl.BlockSpec((4, tn), lambda j: (0, j)),    # stacked BN params
            ],
            out_specs=pl.BlockSpec((B, tn), lambda j: (0, j)),
        ),
        # Output tiles are independent -> megacore can split the W-streaming
        # loop on v7x.  (pl.Buffered(3) on the W spec is a further option on
        # v5e/v6e when B is tiny and HBM latency jitter is exposed.)
        compiler_params=pltpu.CompilerParams(
            dimension_semantics=("parallel",),
            vmem_limit_bytes=vmem_limit),
        cost_estimate=cost,
    )(x, mask, wt, bn_params)

    # Row-wise L2 normalize as a tiny second kernel (keeps the main feature
    # axis parallel; the extra B*D round trip is negligible vs D^2 W bytes).
    tb = B
    if B > 512:
        for cand in (512, 256, 128, 64, 32, 16, 8):
            if B % cand == 0:
                tb = cand
                break
    norm_cost = pl.CostEstimate(flops=3 * B * D, transcendentals=B,
                                bytes_accessed=2 * B * D * out_bytes)
    return pl.pallas_call(
        _l2_normalize_kernel,
        out_shape=jax.ShapeDtypeStruct((B, D), x.dtype),
        grid_spec=pltpu.PrefetchScalarGridSpec(
            num_scalar_prefetch=0,
            grid=(B // tb,),
            in_specs=[pl.BlockSpec((tb, D), lambda i: (i, 0))],
            out_specs=pl.BlockSpec((tb, D), lambda i: (i, 0)),
        ),
        compiler_params=pltpu.CompilerParams(
            dimension_semantics=("parallel",),
            vmem_limit_bytes=int(min(max(8 * tb * D * out_bytes, 16 << 20),
                                     int(0.8 * vmem_cap)))),
        cost_estimate=norm_cost,
    )(gated)


if __name__ == "__main__":
    B, D = 8, 128
    key = jax.random.PRNGKey(0)
    kx, km, kw, kb, kg1, kb1, kg2, kb2 = jax.random.split(key, 8)

    x = jax.random.normal(kx, (B, D), dtype=jnp.float32)
    mask = jax.random.normal(km, (B, D), dtype=jnp.float32)

    # nn.Linear(D, D) params: uniform(-1/sqrt(D), 1/sqrt(D))
    bound = 1.0 / (D ** 0.5)
    w = jax.random.uniform(kw, (D, D), minval=-bound, maxval=bound, dtype=jnp.float32)
    b = jax.random.uniform(kb, (1, D), minval=-bound, maxval=bound, dtype=jnp.float32)

    # BatchNorm1d affine params (randomized to exercise the affine path).
    g1 = 1.0 + 0.1 * jax.random.normal(kg1, (1, D), dtype=jnp.float32)
    be1 = 0.1 * jax.random.normal(kb1, (1, D), dtype=jnp.float32)
    g2 = 1.0 + 0.1 * jax.random.normal(kg2, (1, D), dtype=jnp.float32)
    be2 = 0.1 * jax.random.normal(kb2, (1, D), dtype=jnp.float32)

    out = gated_embedding_unit_reasoning(x, mask, w, b, g1, be1, g2, be2)
    out = jax.block_until_ready(out)

    # Pure-JAX reference (keeps the Linear bias; training-mode BN cancels it).
    def ref(x, mask, w, b, g1, be1, g2, be2, matmul_dtype):
        eps = 1e-5
        x2 = jnp.dot(x.astype(matmul_dtype), w.astype(matmul_dtype).T,
                     preferred_element_type=jnp.float32) + b
        def bn(v, g, bt):
            mu = jnp.mean(v, axis=0, keepdims=True)
            var = jnp.mean((v - mu) ** 2, axis=0, keepdims=True)
            return (v - mu) / jnp.sqrt(var + eps) * g + bt
        t = bn(mask, g1, be1) + bn(x2, g2, be2)
        o = x * jax.nn.sigmoid(t)
        n = jnp.linalg.norm(o, axis=-1, keepdims=True)
        return o / jnp.maximum(n, 1e-12)

    expected_bf16 = ref(x, mask, w, b, g1, be1, g2, be2, jnp.bfloat16)
    expected_f32 = ref(x, mask, w, b, g1, be1, g2, be2, jnp.float32)

    assert out.shape == (B, D)
    norms = jnp.linalg.norm(out, axis=-1)
    assert bool(jnp.all(jnp.abs(norms - 1.0) < 1e-3))
    # Tight check against a reference using the same bf16 matmul operands.
    assert bool(jnp.allclose(out, expected_bf16, rtol=5e-4, atol=1e-5)), (
        "max abs diff vs bf16-matmul reference = %g"
        % float(jnp.max(jnp.abs(out - expected_bf16))))
    # bf16 weight cast only perturbs the (BatchNorm'ed, sigmoid'ed) gate slightly.
    assert bool(jnp.allclose(out, expected_f32, rtol=3e-2, atol=3e-2)), (
        "max abs diff vs f32 reference = %g"
        % float(jnp.max(jnp.abs(out - expected_f32))))

    print("KERNEL_OK")
</pallas_src>

<mosaic_0001>
module attributes {stable_mosaic.version = 11 : i64} {
  func.func @_context_gating_kernel(%arg0: i32, %arg1: memref<8x128xf32, #tpu.memory_space<vmem>>, %arg2: memref<8x128xf32, #tpu.memory_space<vmem>>, %arg3: memref<128x128xbf16, #tpu.memory_space<vmem>>, %arg4: memref<4x128xf32, #tpu.memory_space<vmem>>, %arg5: memref<8x128xf32, #tpu.memory_space<vmem>>) attributes {dimension_semantics = [#tpu.dimension_semantics<parallel>], iteration_bounds = array<i64: 1>, scalar_prefetch = 0 : i64, scratch_operands = 0 : i64, tpu.core_type = #tpu.core_type<tc>, window_params = [{pipeline_mode = #tpu.pipeline_mode<synchronous>, transform_indices = @transform_0, window_bounds = array<i64: 8, 128>}, {transform_indices = @transform_1, window_bounds = array<i64: 8, 128>}, {transform_indices = @transform_2, window_bounds = array<i64: 128, 128>}, {transform_indices = @transform_3, window_bounds = array<i64: 4, 128>}, {transform_indices = @transform_4, window_bounds = array<i64: 8, 128>}]} {
    %c0 = arith.constant 0 : index
    %c0_0 = arith.constant 0 : index
    %0 = vector.load %arg1[%c0, %c0_0] : memref<8x128xf32, #tpu.memory_space<vmem>>, vector<8x128xf32>
    %1 = arith.truncf %0 : vector<8x128xf32> to vector<8x128xbf16>
    %c0_1 = arith.constant 0 : index
    %c0_2 = arith.constant 0 : index
    %2 = vector.load %arg3[%c0_1, %c0_2] : memref<128x128xbf16, #tpu.memory_space<vmem>>, vector<128x128xbf16>
    %cst = arith.constant dense<0.000000e+00> : vector<8x128xf32>
    %3 = tpu.matmul %1, %2, %cst {dimension_numbers = #tpu.dot_dimension_numbers<[1], [0], [0], [1], [0, 0, 1, 1], [], []>} : vector<8x128xbf16>, vector<128x128xbf16>, vector<8x128xf32> -> vector<8x128xf32>
    %c0_3 = arith.constant 0 : index
    %c0_4 = arith.constant 0 : index
    %4 = vector.load %arg4[%c0_3, %c0_4] : memref<4x128xf32, #tpu.memory_space<vmem>>, vector<4x128xf32>
    %c0_5 = arith.constant 0 : index
    %c0_6 = arith.constant 0 : index
    %5 = vector.load %arg2[%c0_5, %c0_6] : memref<8x128xf32, #tpu.memory_space<vmem>>, vector<8x128xf32>
    %6 = vector.extract_strided_slice %4 {offsets = [0, 0], sizes = [1, 128], strides = [1, 1]} : vector<4x128xf32> to vector<1x128xf32>
    %7 = vector.extract_strided_slice %4 {offsets = [1, 0], sizes = [1, 128], strides = [1, 1]} : vector<4x128xf32> to vector<1x128xf32>
    %cst_7 = arith.constant dense<0.000000e+00> : vector<128xf32>
    %8 = vector.multi_reduction <add>, %5, %cst_7 [0] : vector<8x128xf32> to vector<128xf32>
    %9 = vector.shape_cast %8 : vector<128xf32> to vector<1x128xf32>
    %cst_8 = arith.constant 8.000000e+00 : f32
    %10 = vector.broadcast %cst_8 : f32 to vector<1x128xf32>
    %11 = arith.divf %9, %10 : vector<1x128xf32>
    %12 = vector.broadcast %11 : vector<1x128xf32> to vector<8x128xf32>
    %13 = arith.subf %5, %12 : vector<8x128xf32>
    %14 = arith.mulf %13, %13 : vector<8x128xf32>
    %cst_9 = arith.constant dense<0.000000e+00> : vector<128xf32>
    %15 = vector.multi_reduction <add>, %14, %cst_9 [0] : vector<8x128xf32> to vector<128xf32>
    %16 = vector.shape_cast %15 : vector<128xf32> to vector<1x128xf32>
    %cst_10 = arith.constant 8.000000e+00 : f32
    %17 = vector.broadcast %cst_10 : f32 to vector<1x128xf32>
    %18 = arith.divf %16, %17 : vector<1x128xf32>
    %cst_11 = arith.constant 9.99999974E-6 : f32
    %19 = vector.broadcast %cst_11 : f32 to vector<1x128xf32>
    %20 = arith.addf %18, %19 : vector<1x128xf32>
    %21 = math.rsqrt %20 : vector<1x128xf32>
    %22 = arith.mulf %6, %21 : vector<1x128xf32>
    %23 = vector.broadcast %22 : vector<1x128xf32> to vector<8x128xf32>
    %24 = arith.mulf %13, %23 : vector<8x128xf32>
    %25 = vector.broadcast %7 : vector<1x128xf32> to vector<8x128xf32>
    %26 = arith.addf %24, %25 : vector<8x128xf32>
    %27 = vector.extract_strided_slice %4 {offsets = [2, 0], sizes = [1, 128], strides = [1, 1]} : vector<4x128xf32> to vector<1x128xf32>
    %28 = vector.extract_strided_slice %4 {offsets = [3, 0], sizes = [1, 128], strides = [1, 1]} : vector<4x128xf32> to vector<1x128xf32>
    %cst_12 = arith.constant dense<0.000000e+00> : vector<128xf32>
    %29 = vector.multi_reduction <add>, %3, %cst_12 [0] : vector<8x128xf32> to vector<128xf32>
    %30 = vector.shape_cast %29 : vector<128xf32> to vector<1x128xf32>
    %cst_13 = arith.constant 8.000000e+00 : f32
    %31 = vector.broadcast %cst_13 : f32 to vector<1x128xf32>
    %32 = arith.divf %30, %31 : vector<1x128xf32>
    %33 = vector.broadcast %32 : vector<1x128xf32> to vector<8x128xf32>
    %34 = arith.subf %3, %33 : vector<8x128xf32>
    %35 = arith.mulf %34, %34 : vector<8x128xf32>
    %cst_14 = arith.constant dense<0.000000e+00> : vector<128xf32>
    %36 = vector.multi_reduction <add>, %35, %cst_14 [0] : vector<8x128xf32> to vector<128xf32>
    %37 = vector.shape_cast %36 : vector<128xf32> to vector<1x128xf32>
    %cst_15 = arith.constant 8.000000e+00 : f32
    %38 = vector.broadcast %cst_15 : f32 to vector<1x128xf32>
    %39 = arith.divf %37, %38 : vector<1x128xf32>
    %cst_16 = arith.constant 9.99999974E-6 : f32
    %40 = vector.broadcast %cst_16 : f32 to vector<1x128xf32>
    %41 = arith.addf %39, %40 : vector<1x128xf32>
    %42 = math.rsqrt %41 : vector<1x128xf32>
    %43 = arith.mulf %27, %42 : vector<1x128xf32>
    %44 = vector.broadcast %43 : vector<1x128xf32> to vector<8x128xf32>
    %45 = arith.mulf %34, %44 : vector<8x128xf32>
    %46 = vector.broadcast %28 : vector<1x128xf32> to vector<8x128xf32>
    %47 = arith.addf %45, %46 : vector<8x128xf32>
    %48 = arith.addf %26, %47 : vector<8x128xf32>
    %c0_17 = arith.constant 0 : index
    %c0_18 = arith.constant 0 : index
    %49 = vector.load %arg1[%c0_17, %c0_18] : memref<8x128xf32, #tpu.memory_space<vmem>>, vector<8x128xf32>
    %50 = arith.negf %48 : vector<8x128xf32>
    %51 = math.exp %50 : vector<8x128xf32>
    %cst_19 = arith.constant 1.000000e+00 : f32
    %52 = vector.broadcast %cst_19 : f32 to vector<8x128xf32>
    %53 = arith.addf %52, %51 : vector<8x128xf32>
    %54 = arith.divf %52, %53 : vector<8x128xf32>
    %55 = arith.mulf %49, %54 : vector<8x128xf32>
    %c0_20 = arith.constant 0 : index
    %c0_21 = arith.constant 0 : index
    %56 = vector.load %arg5[%c0_20, %c0_21] : memref<8x128xf32, #tpu.memory_space<vmem>>, vector<8x128xf32>
    tpu.vector_store %arg5[%c0_20, %c0_21], %55 {strides = array<i32>} : memref<8x128xf32, #tpu.memory_space<vmem>>, vector<8x128xf32>,
    return
  }
  func.func @transform_0(%arg0: i32) -> (i32, i32) {
    %c0_i32 = arith.constant 0 : i32
    %c0_i32_0 = arith.constant 0 : i32
    %c0_i32_1 = arith.constant 0 : i32
    return %c0_i32, %c0_i32_0 : i32, i32
  }
  func.func @transform_1(%arg0: i32) -> (i32, i32) {
    %c0_i32 = arith.constant 0 : i32
    %c0_i32_0 = arith.constant 0 : i32
    return %c0_i32, %arg0 : i32, i32
  }
  func.func @transform_2(%arg0: i32) -> (i32, i32) {
    %c0_i32 = arith.constant 0 : i32
    %c0_i32_0 = arith.constant 0 : i32
    return %c0_i32, %arg0 : i32, i32
  }
  func.func @transform_3(%arg0: i32) -> (i32, i32) {
    %c0_i32 = arith.constant 0 : i32
    %c0_i32_0 = arith.constant 0 : i32
    return %c0_i32, %arg0 : i32, i32
  }
  func.func @transform_4(%arg0: i32) -> (i32, i32) {
    %c0_i32 = arith.constant 0 : i32
    %c0_i32_0 = arith.constant 0 : i32
    return %c0_i32, %arg0 : i32, i32
  }
}

</mosaic_0001>

<bundles_post_ra>
// kernel: tpu_custom_call.1
= control target key start
LH: loop header
LB: loop body
LE: loop exit
PB: predicated region body
PF: predicated region fallthrough
CT: control target
= control target key end

     0   :  { %9 = vsyncpa [#allocation3], 0  ;;  %s449_s0 = inlined_call_operand.hbm [shape: f32[8,128], index: 0, kind: input, shape index: {}]   ;;  %s450_s1 = inlined_call_operand.hbm [shape: f32[8,128], index: 1, kind: input, shape index: {}]   ;;  %s451_s2 = inlined_call_operand.hbm [shape: bf16[128,128], index: 2, kind: input, shape index: {}]   ;;  %s452_s3 = inlined_call_operand.vmem [shape: f32[4,128], index: 3, kind: input, shape index: {}]   ;;  %s453_s4 = inlined_call_operand.hbm [shape: f32[8,128], index: 4, kind: output, shape index: {}]  }
   0x1   :  { %10 = vsyncpa [#allocation6], 0 }
   0x2   :  { %11 = vsyncpa [#allocation4], 0  ;;  %s396_s15 = smov [#allocation5]   ;;  %s397_s17 = smov [#allocation2]  }
   0x3   :  { %s28_s16 = sshll.u32 %s396_s15, 4  ;;  %s18_s18 = sshll.u32 %s397_s17, 4  ;;  %s29_s16 = int_to_ptr.vmem [resolvable:$true] %s28_s16  ;;  %s19_s18 = int_to_ptr.vmem [resolvable:$true] %s18_s18 }
   0x4   :  { %s318_s19 = scalar_lea.vmem %s29_s16, 128  ;;  %p323_p1 = scmp.lt.s32.totalorder %s29_s16, %s29_s16 }
   0x5   :  { %p319_p0 = scmp.ne.s32.totalorder %s29_s16, %s318_s19  ;;  %p324_p2 = scmp.lt.s32.totalorder %s318_s19, %s318_s19 }
   0x7   :  { %p325_p3 = por %p324_p2, %p323_p1 }
   0x9   :  { %p326_p4 = pnand %p325_p3, %p319_p0 }
   0xb   :  { %329 = shalt.err (!%p326_p4)
}
   0xc   :  { %31 = dma.hbm_to_vmem [thread:$0]  %s450_s1, 128, %s29_s16, [#allocation6]  }
   0xd   :  { %s338_s22 = scalar_lea.vmem %s19_s18, 128  ;;  %p343_p6 = scmp.lt.s32.totalorder %s19_s18, %s19_s18 }
   0xe   :  { %p339_p5 = scmp.ne.s32.totalorder %s19_s18, %s338_s22  ;;  %p344_p7 = scmp.lt.s32.totalorder %s338_s22, %s338_s22 }
  0x10   :  { %p345_p8 = por %p344_p7, %p343_p6 }
  0x12   :  { %p346_p9 = pnand %p345_p8, %p339_p5 }
  0x14   :  { %349 = shalt.err (!%p346_p9)
}
  0x15   :  { %21 = dma.hbm_to_vmem [thread:$0]  %s449_s0, 128, %s19_s18, [#allocation3]  }
  0x16   :  { %s398_s25 = smov [#allocation7]  }
  0x17   :  { %s37_s26 = sshll.u32 %s398_s25, 4  ;;  %s38_s26 = int_to_ptr.vmem [resolvable:$true] %s37_s26 }
  0x18   :  { %s358_s27 = scalar_lea.vmem %s38_s26, 1024  ;;  %p363_p11 = scmp.lt.s32.totalorder %s38_s26, %s38_s26 }
  0x19   :  { %p359_p10 = scmp.ne.s32.totalorder %s38_s26, %s358_s27  ;;  %p364_p12 = scmp.lt.s32.totalorder %s358_s27, %s358_s27 }
  0x1b   :  { %p365_p13 = por %p364_p12, %p363_p11 }
  0x1d   :  { %p366_p0 = pnand %p365_p13, %p359_p10 }
  0x1f   :  { %369 = shalt.err (!%p366_p0)
}
  0x20   :  { %s399_s1 = smov 64   ;;  %s400_s28 = smov 4  }
  0x21   :  { %43 = dma.hbm_to_vmem [thread:$0]  %s451_s2, 1024, %s38_s26, [#allocation6], %s399_s1, %s399_s1, %s400_s28  }
  0x22   :  { %390 = dma.done.wait [#allocation3], 128  }
  0x23   :  { %391 = vsyncadd [#allocation3], 4294967168 }
  0x24   :  { %392 = dma.done.wait [#allocation6], 1152  }
  0x25   :  { %393 = vsyncadd [#allocation6], 4294966144  ;;  %v401_v0 = vmov 0.0   ;;  %vm402_vm0 = vmmov 0   ;;  %v294_v1 = vld [vmem:[#allocation7 + $0x38] sm:$0xff]   ;;  %v295_v2 = vld [vmem:[#allocation7 + $0x30] sm:$0xff]   ;;  %v184_v49 = vlaneseq }
  0x26   :  { %266 = vmatprep.subr.bf16.mxu0 %v401_v0  ;;  %282 = vmatprep.mubr.msk.bf16.mxu0 %vm402_vm0, %v401_v0  ;;  %v296_v3 = vld [vmem:[#allocation7 + $0x28] sm:$0xff]   ;;  %v297_v4 = vld [vmem:[#allocation7 + $0x20] sm:$0xff]   ;;  %v298_v5 = vld [vmem:[#allocation7 + $0x18] sm:$0xff]  }
  0x27   :  { %267 = vmatpush3.bf16.msra.mxu0 %v294_v1  ;;  %v299_v6 = vld [vmem:[#allocation7 + $0x10] sm:$0xff]   ;;  %v300_v7 = vld [vmem:[#allocation7 + $0x8] sm:$0xff]   ;;  %v301_v8 = vld [vmem:[#allocation7] sm:$0xff]   ;;  %v185_v51 = vshrl.u32 %v184_v49, 7 }
  0x28   :  { %268 = vmatprep.subr.bf16.mxu0 %v401_v0  ;;  %v438_v9 = vld [vmem:[#allocation2] sm:$0xff]  ;;  %v163_v11 = vld [vmem:[#allocation5] sm:$0xff] }
  0x29   :  { %v57_v10 = vpack.c.bf16 %v438_v9, %v438_v9  ;;  %v164_v12 = vrot.slane %v163_v11, 4  ;;  %v162_v53 = vld [vmem:[%s452_s3] sm:$0xf]  ;;  %v186_v55 = vsub.s32 0, %v185_v51  ;;  %v191_v57 = vsub.s32 1, %v185_v51  ;;  %s403_s3 = smov [#allocation8]  }
  0x2a   :  { %v215_v58 = vsub.s32 2, %v185_v51  ;;  %v220_v59 = vsub.s32 3, %v185_v51  ;;  %s238_s5 = sshll.u32 %s403_s3, 4  ;;  %s239_s5 = int_to_ptr.vmem [resolvable:$true] %s238_s5 }
  0x2b   :  { %269 = vmatpush3.bf16.msra.mxu0 %v295_v2  ;;  %v165_v13 = vadd.f32 %v164_v12, %v163_v11  ;;  %v192_v62 = vrot.slane %v162_v53, %v191_v57  ;;  %s370_s6 = scalar_lea.vmem %s239_s5, 128  ;;  %p375_p2 = scmp.lt.s32.totalorder %s239_s5, %s239_s5 }
  0x2c   :  { %270 = vmatprep.subr.bf16.mxu0 %v401_v0  ;;  %v221_v1 = vrot.slane %v162_v53, %v220_v59  ;;  %p371_p1 = scmp.ne.s32.totalorder %s239_s5, %s370_s6  ;;  %p376_p3 = scmp.lt.s32.totalorder %s370_s6, %s370_s6 }
  0x2d   :  { %v166_v14 = vrot.slane %v165_v13, 2 }
  0x2e   :  { %p377_p4 = por %p376_p3, %p375_p2 }
  0x2f   :  { %271 = vmatpush3.bf16.msra.mxu0 %v296_v3  ;;  %v167_v15 = vadd.f32 %v166_v14, %v165_v13 }
  0x30   :  { %272 = vmatprep.subr.bf16.mxu0 %v401_v0  ;;  %p378_p5 = pnand %p377_p4, %p371_p1 }
  0x31   :  { %v168_v16 = vrot.slane %v167_v15, 1 }
  0x33   :  { %273 = vmatpush3.bf16.msra.mxu0 %v297_v4  ;;  %v169_v17 = vadd.f32 %v168_v16, %v167_v15 }
  0x34   :  { %274 = vmatprep.subr.bf16.mxu0 %v401_v0 }
  0x35   :  { %v171_v18 = vmul.f32 0.125, %v169_v17 }
  0x37   :  { %275 = vmatpush3.bf16.msra.mxu0 %v298_v5  ;;  %v172_v19 = vsub.f32 %v163_v11, %v171_v18 }
  0x38   :  { %276 = vmatprep.subr.bf16.mxu0 %v401_v0 }
  0x39   :  { %v173_v20 = vmul.f32 %v172_v19, %v172_v19 }
  0x3b   :  { %277 = vmatpush3.bf16.msra.mxu0 %v299_v6  ;;  %v174_v21 = vrot.slane %v173_v20, 4 }
  0x3c   :  { %278 = vmatprep.subr.bf16.mxu0 %v401_v0 }
  0x3d   :  { %v175_v22 = vadd.f32 %v174_v21, %v173_v20 }
  0x3f   :  { %279 = vmatpush3.bf16.msra.mxu0 %v300_v7  ;;  %v176_v24 = vrot.slane %v175_v22, 2 }
  0x40   :  { %280 = vmatprep.subr.bf16.mxu0 %v401_v0 }
  0x41   :  { %v177_v29 = vadd.f32 %v176_v24, %v175_v22 }
  0x43   :  { %281 = vmatpush3.bf16.msra.mxu0 %v301_v8  ;;  %v178_v33 = vrot.slane %v177_v29, 1 }
  0x45   :  { %v179_v36 = vadd.f32 %v178_v33, %v177_v29 }
  0x46   :  { %283 = vmatmul.mubr.bf16.vlgmr.msra.gmra.mxu0 %v57_v10 }
  0x47   :  { %v180_v39 = vmul.f32 0.125, %v179_v36 }
  0x49   :  { %v181_v42 = vadd.f32 1e-05, %v180_v39 }
  0x4b   :  { %302 = vrsqrt.f32 %v181_v42 }
  0x58   :  { %v303_v52 = vpop.eup %302 }
  0x59   :  { %v183_v54 = vmul.f32 %v303_v52, %v162_v53 }
  0x5b   :  { %v187_v56 = vrot.slane %v183_v54, %v186_v55 }
  0x5d   :  { %v188_v61 = vmul.f32 %v187_v56, %v172_v19 }
  0x5f   :  { %v193_v2 = vadd.f32 %v192_v62, %v188_v61 }
 0x106   :  { %v156_v23 = vpop.f32.mrf.mxu0 }
 0x107   :  { %v194_v25 = vrot.slane %v156_v23, 4 }
 0x108   :  { %v284_v26 = vpop.f32.mrf.mxu0 }
 0x109   :  { %v195_v27 = vadd.f32 %v194_v25, %v156_v23 }
 0x10a   :  { %v159_v28 = vpop.f32.mrf.mxu0 }
 0x10b   :  { %v196_v30 = vrot.slane %v195_v27, 2 }
 0x10c   :  { %v285_v31 = vpop.f32.mrf.mxu0 }
 0x10d   :  { %v197_v32 = vadd.f32 %v196_v30, %v195_v27 }
 0x10f   :  { %v198_v34 = vrot.slane %v197_v32, 1 }
 0x111   :  { %v199_v35 = vadd.f32 %v198_v34, %v197_v32 }
 0x113   :  { %v200_v37 = vmul.f32 0.125, %v199_v35 }
 0x115   :  { %v201_v38 = vsub.f32 %v156_v23, %v200_v37 }
 0x117   :  { %v202_v40 = vmul.f32 %v201_v38, %v201_v38 }
 0x119   :  { %v203_v41 = vrot.slane %v202_v40, 4 }
 0x11b   :  { %v204_v43 = vadd.f32 %v203_v41, %v202_v40 }
 0x11d   :  { %v205_v44 = vrot.slane %v204_v43, 2 }
 0x11f   :  { %v206_v45 = vadd.f32 %v205_v44, %v204_v43 }
 0x121   :  { %v207_v46 = vrot.slane %v206_v45, 1 }
 0x123   :  { %v208_v47 = vadd.f32 %v207_v46, %v206_v45 }
 0x125   :  { %v209_v48 = vmul.f32 0.125, %v208_v47 }
 0x127   :  { %v210_v50 = vadd.f32 1e-05, %v209_v48 }
 0x129   :  { %304 = vrsqrt.f32 %v210_v50 }
 0x136   :  { %v305_v60 = vpop.eup %304 }
 0x137   :  { %v212_v63 = vmul.f32 %v305_v60, %v162_v53 }
 0x139   :  { %v216_v0 = vrot.slane %v212_v63, %v215_v58 }
 0x13b   :  { %v217_v3 = vmul.f32 %v216_v0, %v201_v38 }
 0x13d   :  { %v222_v4 = vadd.f32 %v221_v1, %v217_v3 }
 0x13f   :  { %v223_v5 = vadd.f32 %v222_v4, %v193_v2 }
 0x141   :  { %v256_v6 = vmul.f32 -1.442695, %v223_v5 }
 0x143   :  { %306 = vpow2.f32 %v256_v6 }
 0x150   :  { %v307_v7 = vpop.eup %306 }
 0x151   :  { %v227_v8 = vadd.f32 1.0, %v307_v7 }
 0x153   :  { %308 = vrcp.f32 %v227_v8 }
 0x160   :  { %v309_v10 = vpop.eup %308 }
 0x161   :  { %v230_v11 = vmul.f32 %v309_v10, %v438_v9 }
 0x163   :  { %231 = vst [vmem:[#allocation8] sm:$0xff] %v230_v11 }
 0x164   :  { %381 = shalt.err (!%p378_p5)
}
 0x165   :  { %241 = dma.vmem_to_hbm [thread:$0]  %s239_s5, 128, %s453_s4, [#allocation4]  }
 0x166   :  { %394 = dma.done.wait [#allocation4], 128  }
 0x167   :  { %395 = vsyncadd [#allocation4], 4294967168 }
 0x168   :  { %245 = vsyncpa [#allocation3], 1 }
 0x169   :  { %246 = vsyncpa [#allocation6], 1 }
 0x16a   :  { %247 = vsyncpa [#allocation4], 1 }

</bundles_post_ra>
